<compile_context>
chip_gen: v5e
topology: v5e:2x2
jax: 0.10.0
libtpu: 0.0.40
codegen_flags: <defaults>
</compile_context>

<pallas_src>
import functools

import jax
import jax.numpy as jnp
from jax import lax
from jax.experimental import pallas as pl
from jax.experimental.pallas import tpu as pltpu

_LANE = 128
_SUB = 8
_ROW_TILE = _SUB * _LANE           # 1024-element alignment for the kernel prefix
_MAX_BLOCK_ROWS = 4096             # 4096 x 128 x f32 = 2 MiB per input block


def _focal_elementwise(x, t, alpha, gamma, logits, binary_targets=False):
    """Per-element focal loss in f32 (matches torch forward, weight_mask=None)."""
    if logits:
        # F.binary_cross_entropy_with_logits(reduction='none')
        bce = jnp.maximum(x, 0.0) - x * t + jnp.log1p(jnp.exp(-jnp.abs(x)))
        pt = jnp.exp(-bce)
    elif binary_targets:
        # Hard {0,1} targets: 1 transcendental per element instead of 3.
        pt = jnp.where(t > 0.5, x, 1.0 - x)
        bce = -jnp.maximum(jnp.log(pt), -100.0)   # torch clamps log terms at -100
    else:
        # F.binary_cross_entropy(reduction='none'): torch clamps log terms at -100
        log_p = jnp.maximum(jnp.log(x), -100.0)
        log_1mp = jnp.maximum(jnp.log1p(-x), -100.0)
        bce = -(t * log_p + (1.0 - t) * log_1mp)
        pt = jnp.exp(-bce)
    one_minus_pt = 1.0 - pt
    g = float(gamma)
    if g == int(g) and int(g) >= 0:
        gi = int(g)
        if gi == 0:
            mod = jnp.ones_like(one_minus_pt)
        else:
            mod = one_minus_pt
            for _ in range(gi - 1):
                mod = mod * one_minus_pt
    else:
        # non-integer gamma: clamp at 0 so rounding (pt > 1) can't produce NaN
        mod = jnp.maximum(one_minus_pt, 0.0) ** g
    out = mod * bce
    if float(alpha) != 1.0:
        out = alpha * out
    return out


def _partial_sum_kernel(x_ref, t_ref, out_ref, *, alpha, gamma, logits,
                        binary_targets, valid_rows_last):
    block_rows = x_ref.shape[0]
    x = x_ref[...].astype(jnp.float32)
    t = t_ref[...].astype(jnp.float32)
    fl = _focal_elementwise(x, t, alpha, gamma, logits, binary_targets)

    def _reduce(v):
        # (block_rows, 128) -> (8, 128): vreg-aligned groups, pure VPU adds.
        return jnp.sum(v.reshape(block_rows // _SUB, _SUB, _LANE), axis=0)

    if valid_rows_last == block_rows:
        # block_rows divides rows exactly: no invalid rows anywhere.
        out_ref[0] = _reduce(fl)
    else:
        # Only the final grid step can contain Pallas-padded (undefined) rows;
        # mask them there and only there.
        is_last = pl.program_id(0) == pl.num_programs(0) - 1

        @pl.when(is_last)
        def _():
            row = lax.broadcasted_iota(jnp.int32, fl.shape, 0)
            out_ref[0] = _reduce(jnp.where(row < valid_rows_last, fl, 0.0))

        @pl.when(jnp.logical_not(is_last))
        def _():
            out_ref[0] = _reduce(fl)


def _elem_kernel(x_ref, t_ref, o_ref, *, alpha, gamma, logits, binary_targets):
    x = x_ref[...].astype(jnp.float32)
    t = t_ref[...].astype(jnp.float32)
    o_ref[...] = _focal_elementwise(
        x, t, alpha, gamma, logits, binary_targets).astype(o_ref.dtype)


def _pick_block_rows(rows):
    """Biggest block <= _MAX_BLOCK_ROWS, but >= 2 blocks when possible (v7x 2 TCs)."""
    if rows <= 2 * _MAX_BLOCK_ROWS:
        half = -(-rows // 2)
        return min(rows, -(-half // _SUB) * _SUB)
    return _MAX_BLOCK_ROWS


def focal_loss(inputs, targets, *, alpha=1.0, gamma=2, logits=False,
               reduce=True, weight_mask=None, assume_binary_targets=False):
    """Pallas implementation of FocalLoss.forward."""
    if weight_mask is not None:
        # TODO(synk): per-element BCE weight (weight_mask) not implemented.
        raise NotImplementedError("weight_mask is not supported")

    orig_shape = inputs.shape
    n = int(inputs.size)
    alpha = float(alpha)

    out_dtype = inputs.dtype if jnp.issubdtype(inputs.dtype, jnp.floating) \
        else jnp.float32

    binary_targets = (not logits) and (
        assume_binary_targets
        or targets.dtype == jnp.bool_
        or jnp.issubdtype(targets.dtype, jnp.integer))

    x_flat = inputs.reshape(-1)
    t_flat = targets.reshape(-1)
    if t_flat.dtype == jnp.bool_:
        t_flat = t_flat.astype(jnp.int8)   # 1-byte stream; upcast to f32 in-kernel

    # Kernel streams the 1024-element-aligned prefix in native dtypes; the
    # (<1024-element) tail is handled with plain jnp (no full-tensor pad/copy).
    n_main = n - (n % _ROW_TILE)
    if n_main != n:
        x_tail = x_flat[n_main:].astype(jnp.float32)
        t_tail = t_flat[n_main:].astype(jnp.float32)
        fl_tail = _focal_elementwise(x_tail, t_tail, alpha, gamma, logits,
                                     binary_targets)
    else:
        fl_tail = None

    if n_main == 0:
        # Tensor smaller than one aligned tile: pure-jnp fallback.
        if reduce:
            return jnp.sum(fl_tail) / jnp.float32(n)
        return fl_tail.astype(out_dtype).reshape(orig_shape)

    x2 = (x_flat if n_main == n else x_flat[:n_main]).reshape(-1, _LANE)
    t2 = (t_flat if n_main == n else t_flat[:n_main]).reshape(-1, _LANE)
    rows = n_main // _LANE

    block_rows = _pick_block_rows(rows)
    num_blocks = -(-rows // block_rows)
    valid_rows_last = rows - (num_blocks - 1) * block_rows
    grid = (num_blocks,)

    in_specs = [
        pl.BlockSpec((block_rows, _LANE), lambda i: (i, 0)),
        pl.BlockSpec((block_rows, _LANE), lambda i: (i, 0)),
    ]
    cparams = pltpu.CompilerParams(
        dimension_semantics=("parallel",),
        vmem_limit_bytes=32 * 1024 * 1024)

    n_trans = (1 if binary_targets else 3) * n_main
    in_bytes = (x2.size * x2.dtype.itemsize) + (t2.size * t2.dtype.itemsize)

    if reduce:
        kernel = functools.partial(
            _partial_sum_kernel, alpha=alpha, gamma=gamma, logits=logits,
            binary_targets=binary_targets, valid_rows_last=valid_rows_last)
        cost = pl.CostEstimate(
            flops=15 * n_main, transcendentals=n_trans,
            bytes_accessed=in_bytes + num_blocks * _SUB * _LANE * 4)
        partials = pl.pallas_call(
            kernel,
            out_shape=jax.ShapeDtypeStruct((num_blocks, _SUB, _LANE),
                                           jnp.float32),
            grid=grid,
            in_specs=in_specs,
            out_specs=pl.BlockSpec((1, _SUB, _LANE), lambda i: (i, 0, 0)),
            compiler_params=cparams,
            cost_estimate=cost,
        )(x2, t2)
        total = jnp.sum(partials)
        if fl_tail is not None:
            total = total + jnp.sum(fl_tail)
        return total / jnp.float32(n)
    else:
        kernel = functools.partial(
            _elem_kernel, alpha=alpha, gamma=gamma, logits=logits,
            binary_targets=binary_targets)
        cost = pl.CostEstimate(
            flops=15 * n_main, transcendentals=n_trans,
            bytes_accessed=in_bytes + n_main * jnp.dtype(out_dtype).itemsize)
        out = pl.pallas_call(
            kernel,
            out_shape=jax.ShapeDtypeStruct((rows, _LANE), out_dtype),
            grid=grid,
            in_specs=in_specs,
            out_specs=pl.BlockSpec((block_rows, _LANE), lambda i: (i, 0)),
            compiler_params=cparams,
            cost_estimate=cost,
        )(x2, t2)
        out_flat = out.reshape(-1)
        if fl_tail is not None:
            out_flat = jnp.concatenate([out_flat, fl_tail.astype(out_dtype)])
        return out_flat.reshape(orig_shape)


def _focal_loss_ref(inputs, targets, *, alpha=1.0, gamma=2, logits=False,
                    reduce=True):
    x = inputs.astype(jnp.float32)
    t = targets.astype(jnp.float32)
    fl = _focal_elementwise(x, t, float(alpha), gamma, logits)
    return jnp.mean(fl) if reduce else fl


if __name__ == "__main__":
    key = jax.random.PRNGKey(0)
    k1, k2, k3, k4, k5, k6 = jax.random.split(key, 6)

    # Small NCHW-like shape: batch=2, channels=4, spatial=16x16 (2048 elems).
    shape = (2, 4, 16, 16)
    # logits=False => inputs are probabilities in (0, 1)
    inputs = jax.random.uniform(k1, shape, dtype=jnp.float32,
                                minval=1e-4, maxval=1.0 - 1e-4)
    targets = jax.random.bernoulli(k2, p=0.3, shape=shape).astype(jnp.float32)

    # Default FocalLoss(): alpha=1, gamma=2, logits=False, reduce=True
    loss = focal_loss(inputs, targets, alpha=1.0, gamma=2,
                      logits=False, reduce=True)
    loss = jax.block_until_ready(loss)
    ref = _focal_loss_ref(inputs, targets)
    assert jnp.allclose(loss, ref, rtol=1e-5, atol=1e-6), (loss, ref)

    # reduce=False elementwise path (output in input dtype).
    fl_map = jax.block_until_ready(
        focal_loss(inputs, targets, reduce=False))
    ref_map = _focal_loss_ref(inputs, targets, reduce=False)
    assert fl_map.shape == shape and fl_map.dtype == inputs.dtype
    assert jnp.allclose(fl_map, ref_map, rtol=1e-5, atol=1e-6)

    # Binary-target fast path: bool targets streamed as int8.
    targets_b = jax.random.bernoulli(k2, p=0.3, shape=shape)
    loss_b = jax.block_until_ready(focal_loss(inputs, targets_b))
    assert jnp.allclose(loss_b, ref, rtol=1e-5, atol=1e-6), (loss_b, ref)

    # Ragged size: exercises the aligned-prefix kernel + jnp tail path.
    shape2 = (3, 5, 7, 11)   # 1155 elements: 1024-prefix kernel + 131-elem tail
    inputs2 = jax.random.uniform(k3, shape2, dtype=jnp.float32,
                                 minval=1e-4, maxval=1.0 - 1e-4)
    targets2 = jax.random.bernoulli(k4, p=0.3, shape=shape2).astype(jnp.float32)
    loss2 = jax.block_until_ready(focal_loss(inputs2, targets2))
    ref2 = _focal_loss_ref(inputs2, targets2)
    assert jnp.allclose(loss2, ref2, rtol=1e-5, atol=1e-6), (loss2, ref2)

    # Partial-last-block path: rows=24, block_rows=16 -> masked last step.
    shape3 = (3, 8, 128)
    inputs3 = jax.random.uniform(k5, shape3, dtype=jnp.float32,
                                 minval=1e-4, maxval=1.0 - 1e-4)
    targets3 = jax.random.bernoulli(k6, p=0.3, shape=shape3).astype(jnp.float32)
    loss3 = jax.block_until_ready(focal_loss(inputs3, targets3))
    ref3 = _focal_loss_ref(inputs3, targets3)
    assert jnp.allclose(loss3, ref3, rtol=1e-5, atol=1e-6), (loss3, ref3)

    print("KERNEL_OK")
</pallas_src>

<mosaic_0001>
module attributes {stable_mosaic.version = 11 : i64} {
  func.func @_partial_sum_kernel(%arg0: i32, %arg1: memref<8x128xf32, #tpu.memory_space<vmem>>, %arg2: memref<8x128xf32, #tpu.memory_space<vmem>>, %arg3: memref<1x8x128xf32, #tpu.memory_space<vmem>>) attributes {dimension_semantics = [#tpu.dimension_semantics<parallel>], iteration_bounds = array<i64: 2>, scalar_prefetch = 0 : i64, scratch_operands = 0 : i64, tpu.core_type = #tpu.core_type<tc>, window_params = [{transform_indices = @transform_0, window_bounds = array<i64: 8, 128>}, {transform_indices = @transform_1, window_bounds = array<i64: 8, 128>}, {transform_indices = @transform_2, window_bounds = array<i64: 1, 8, 128>}]} {
    %c0 = arith.constant 0 : index
    %c0_0 = arith.constant 0 : index
    %0 = vector.load %arg1[%c0, %c0_0] : memref<8x128xf32, #tpu.memory_space<vmem>>, vector<8x128xf32>
    %c0_1 = arith.constant 0 : index
    %c0_2 = arith.constant 0 : index
    %1 = vector.load %arg2[%c0_1, %c0_2] : memref<8x128xf32, #tpu.memory_space<vmem>>, vector<8x128xf32>
    %2 = math.log %0 : vector<8x128xf32>
    %cst = arith.constant -1.000000e+02 : f32
    %3 = vector.broadcast %cst : f32 to vector<8x128xf32>
    %4 = arith.maximumf %2, %3 : vector<8x128xf32>
    %cst_3 = arith.constant 0.000000e+00 : f32
    %5 = vector.broadcast %cst_3 : f32 to vector<8x128xf32>
    %6 = arith.subf %5, %0 : vector<8x128xf32>
    %7 = math.log1p %6 : vector<8x128xf32>
    %cst_4 = arith.constant -1.000000e+02 : f32
    %8 = vector.broadcast %cst_4 : f32 to vector<8x128xf32>
    %9 = arith.maximumf %7, %8 : vector<8x128xf32>
    %10 = arith.mulf %1, %4 : vector<8x128xf32>
    %cst_5 = arith.constant 1.000000e+00 : f32
    %11 = vector.broadcast %cst_5 : f32 to vector<8x128xf32>
    %12 = arith.subf %11, %1 : vector<8x128xf32>
    %13 = arith.mulf %12, %9 : vector<8x128xf32>
    %14 = arith.addf %10, %13 : vector<8x128xf32>
    %cst_6 = arith.constant 0.000000e+00 : f32
    %15 = vector.broadcast %cst_6 : f32 to vector<8x128xf32>
    %16 = arith.subf %15, %14 : vector<8x128xf32>
    %cst_7 = arith.constant 0.000000e+00 : f32
    %17 = vector.broadcast %cst_7 : f32 to vector<8x128xf32>
    %18 = arith.subf %17, %16 : vector<8x128xf32>
    %19 = math.exp %18 : vector<8x128xf32>
    %cst_8 = arith.constant 1.000000e+00 : f32
    %20 = vector.broadcast %cst_8 : f32 to vector<8x128xf32>
    %21 = arith.subf %20, %19 : vector<8x128xf32>
    %22 = arith.mulf %21, %21 : vector<8x128xf32>
    %23 = arith.mulf %22, %16 : vector<8x128xf32>
    %24 = vector.shape_cast %23 : vector<8x128xf32> to vector<1x8x128xf32>
    %cst_9 = arith.constant dense<0.000000e+00> : vector<8x128xf32>
    %25 = vector.multi_reduction <add>, %24, %cst_9 [0] : vector<1x8x128xf32> to vector<8x128xf32>
    %c0_10 = arith.constant 0 : index
    %c0_11 = arith.constant 0 : index
    %c0_12 = arith.constant 0 : index
    %26 = vector.load %arg3[%c0_10, %c0_11, %c0_12] : memref<1x8x128xf32, #tpu.memory_space<vmem>>, vector<1x8x128xf32>
    %27 = vector.shape_cast %26 : vector<1x8x128xf32> to vector<8x128xf32>
    %28 = vector.shape_cast %25 : vector<8x128xf32> to vector<1x8x128xf32>
    tpu.vector_store %arg3[%c0_10, %c0_11, %c0_12], %28 {strides = array<i32>} : memref<1x8x128xf32, #tpu.memory_space<vmem>>, vector<1x8x128xf32>,
    return
  }
  func.func @transform_0(%arg0: i32) -> (i32, i32) {
    %c0_i32 = arith.constant 0 : i32
    %c0_i32_0 = arith.constant 0 : i32
    return %arg0, %c0_i32 : i32, i32
  }
  func.func @transform_1(%arg0: i32) -> (i32, i32) {
    %c0_i32 = arith.constant 0 : i32
    %c0_i32_0 = arith.constant 0 : i32
    return %arg0, %c0_i32 : i32, i32
  }
  func.func @transform_2(%arg0: i32) -> (i32, i32, i32) {
    %c0_i32 = arith.constant 0 : i32
    %c0_i32_0 = arith.constant 0 : i32
    %c0_i32_1 = arith.constant 0 : i32
    return %arg0, %c0_i32, %c0_i32_0 : i32, i32, i32
  }
}

</mosaic_0001>

<bundles_post_ra>
// kernel: tpu_custom_call.1
= control target key start
LH: loop header
LB: loop body
LE: loop exit
PB: predicated region body
PF: predicated region fallthrough
CT: control target
= control target key end

     0   :  { %7 = vsyncpa [#allocation3], 0  ;;  %s722_s0 = inlined_call_operand.hbm [shape: f32[16,128], index: 0, kind: input, shape index: {}]   ;;  %s723_s1 = inlined_call_operand.hbm [shape: f32[16,128], index: 1, kind: input, shape index: {}]   ;;  %s724_s2 = inlined_call_operand.hbm [shape: f32[2,8,128], index: 2, kind: output, shape index: {}]  }
   0x1   :  { %9 = vsyncpa [#allocation3 + $0x1], 0 }
   0x2   :  { %10 = vsyncpa [#allocation6], 0 }
   0x3   :  { %12 = vsyncpa [#allocation6 + $0x1], 0 }
   0x4   :  { %13 = vsyncpa [#allocation4], 0 }
   0x5   :  { %15 = vsyncpa [#allocation4 + $0x1], 0  ;;  %s557_s9 = smov 0   ;;  %s559_s10 = smov 0  }
   0x6   :  { %s561_s11 = smov 0   ;;  %s563_s12 = smov 0  }
   0x7 LB: > { %s578_s13 = sadd.s32 4294967295, %s540_s12   ;;  %s338_s14 = sadd.s32 4294967294, %s540_s12   ;;  %s540_s12 = sphi %s563_s12, %s735_s12   ;;  %s536_s11 = sphi %s561_s11, %s734_s11   ;;  %s532_s10 = sphi %s559_s10, %s733_s10   ;;  %s528_s9 = sphi %s557_s9, %s732_s9  }
   0x8   : > { %s582_s15 = sadd.s32 1, %s540_s12   ;;  %s28_s16 = sadd.s32 1, %s536_s11 }
   0x9   : > { %s25_s17 = ssub.s32 %s540_s12, %s582_s15  ;;  %p35_p0 = scmp.ne.s32.totalorder %s536_s11, %s532_s10 }
   0xa   : > { %p26_p1 = scmp.eq.s32.totalorder %s25_s17, 0  ;;  %p36_p2 = scmp.eq.s32.totalorder %s540_s12, 0 }
   0xb   : > { %p41_p3 = scmp.ne.s32.totalorder %s532_s10, %s528_s9  ;;  %p42_p4 = scmp.eq.s32.totalorder %s578_s13, 0 }
   0xc   : > { %s594_s18 = scalar_select %p26_p1, %s536_s11, %s28_s16  }
   0xd   : > { %p596_p5 = por %p36_p2, %p35_p0  ;;  %p600_p6 = por %p42_p4, %p41_p3 }
   0xe   : > { %p91_p7 = scmp.eq.s32.totalorder %s578_s13, 1  ;;  %p97_p8 = scmp.eq.s32.totalorder %s338_s14, 1 }
   0xf   : > { %p370_p10 = scmp.lt.s32.totalorder %s540_s12, 2  ;;  %s616_s23 = sand.u32 1, %s536_s11  }
  0x10   : > { %p607_p11 = por %p91_p7, %p35_p0  ;;  %p611_p12 = por %p97_p8, %p41_p3 }
  0x11   : > { %s342_s24 = sshll.u32 %s540_s12, 3  ;;  %s341_s25 = sshll.u32 %s616_s23, 3 }
  0x12   : > { %s125_s28 = scalar_lea.hbm %s722_s0, %s342_s24  ;;  %s121_s30 = scalar_lea.vmem [#allocation2], %s341_s25 }
  0x13   : > { %s127_s29 = sshll.u32 %s125_s28, 4  ;;  %s129_s3 = sshll.u32 %s121_s30, 4  ;;  %s128_s29 = int_to_ptr.hbm [resolvable:$true] %s127_s29  ;;  %s130_s3 = int_to_ptr.vmem [resolvable:$true] %s129_s3 }
  0x14   : > { %p625_p13 = pnand %p370_p10, %p596_p5  ;;  %p345_p0 = scmp.ge.s32.totalorder %s540_s12, 1 }
  0x15   : > { %p153_p1 = scmp.lt.s32.totalorder %s540_s12, 3  ;;  %s118_s5 = scalar_lea.sflag [#allocation3], %s616_s23 }
  0x16   : > { %s410_s6 = sshra.s32 %s128_s29, 4  ;;  %p414_p3 = pneg %p625_p13  ;;  %s411_s6 = int_to_ptr.hbm [resolvable:$true] %s410_s6 }
  0x17   : > { %s412_s7 = scalar_lea.hbm %s411_s6, 8  ;;  %s417_s16 = scalar_lea.hbm %s722_s0, 16 }
  0x18   : > { %p413_p2 = scmp.ne.s32.totalorder %s411_s6, %s412_s7  ;;  %p418_p5 = scmp.lt.s32.totalorder %s411_s6, %s722_s0 }
  0x19   : > { %p419_p8 = scmp.lt.s32.totalorder %s417_s16, %s412_s7 }
  0x1a   : > { %p415_p4 = pnand %p414_p3, %p413_p2 }
  0x1b   : > { %p420_p10 = por %p419_p8, %p418_p5 }
  0x1c   : > { %p416_p7 = pneg %p415_p4 }
  0x1e   : > { %p421_p9 = pnand %p420_p10, %p416_p7 }
  0x20   : > { %424 = shalt.err (!%p421_p9)
}
  0x21   : > { %362 = dma.hbm_to_vmem [thread:$0]  (!%p625_p13), %s128_s29, 128, %s130_s3, %s118_s5  }
  0x22   : > { %p649_p2 = pnand %p345_p0, %p153_p1  ;;  %s144_s30 = scalar_lea.hbm %s723_s1, %s342_s24 }
  0x23   : > { %s146_s6 = sshll.u32 %s144_s30, 4  ;;  %s140_s7 = scalar_lea.vmem [#allocation5], %s341_s25  ;;  %s147_s6 = int_to_ptr.hbm [resolvable:$true] %s146_s6 }
  0x24   : > { %s148_s8 = sshll.u32 %s140_s7, 4  ;;  %s137_s14 = scalar_lea.sflag [#allocation6], %s616_s23  ;;  %s149_s8 = int_to_ptr.vmem [resolvable:$true] %s148_s8 }
  0x25   : > { %s440_s16 = sshra.s32 %s147_s6, 4  ;;  %s447_s5 = scalar_lea.hbm %s723_s1, 16  ;;  %s441_s16 = int_to_ptr.hbm [resolvable:$true] %s440_s16 }
  0x26   : > { %s442_s17 = scalar_lea.hbm %s441_s16, 8  ;;  %p448_p4 = scmp.lt.s32.totalorder %s441_s16, %s723_s1 }
  0x27   : > { %p443_p9 = scmp.ne.s32.totalorder %s441_s16, %s442_s17  ;;  %p449_p7 = scmp.lt.s32.totalorder %s447_s5, %s442_s17 }
  0x29   : > { %p445_p0 = pnand %p443_p9, %p414_p3  ;;  %p450_p5 = por %p449_p7, %p448_p4 }
  0x2b   : > { %p446_p1 = pneg %p445_p0 }
  0x2d   : > { %p451_p8 = pnand %p450_p5, %p446_p1 }
  0x2f   : > { %454 = shalt.err (!%p451_p8)
}
  0x30   : > { %365 = dma.hbm_to_vmem [thread:$0]  (!%p625_p13), %s147_s6, 128, %s149_s8, %s137_s14  }
  0x31   : > { %157 = sbr.rel (%p649_p2) target bundleno = 100 (0x64), region = 28  ;;  %s671_s23 = sand.u32 (!%p649_p2), 1, %s532_s10  }
  0x32   : > { %s674_s25 = sshll.u32 (!%p649_p2), %s671_s23, 3  ;;  %s160_s27 = scalar_lea.sflag (!%p649_p2), [#allocation3], %s671_s23 }
  0x33   : > { %s163_s28 = scalar_lea.vmem (!%p649_p2), [#allocation2], %s674_s25 }
  0x36   : > { %515 = dma.done.wait (%p600_p6), %s160_s27, 128  }
  0x37   : > { %517 = vsyncadd (%p600_p6), %s160_s27, 4294967168  ;;  %s170_s4 = scalar_lea.sflag [#allocation6], %s671_s23  ;;  %s173_s26 = scalar_lea.vmem [#allocation5], %s674_s25 }
  0x38   : > { %519 = dma.done.wait (%p600_p6), %s170_s4, 128  }
  0x39   : > { %521 = vsyncadd (%p600_p6), %s170_s4, 4294967168  ;;  %v200_v0 = vld [vmem:[%s163_s28] sm:$0xff]  ;;  %v201_v8 = vld [vmem:[%s173_s26] sm:$0xff]  ;;  %s350_s20 = sshll.u32 %s578_s13, 3  ;;  %s199_s8 = scalar_lea.vmem [#allocation7], %s674_s25 }
  0x3a   : > { %404 = vlog2.f32 %v200_v0  ;;  %v205_v1 = vsub.f32 0.0, %v200_v0  ;;  %v217_v13 = vsub.f32 1.0, %v201_v8  ;;  %s240_s7 = scalar_lea.hbm %s724_s2, %s350_s20  ;;  %s242_s14 = sshll.u32 %s199_s8, 4  ;;  %s243_s14 = int_to_ptr.vmem [resolvable:$true] %s242_s14 }
  0x3b   : > { %s244_s16 = sshll.u32 %s240_s7, 4  ;;  %s230_s17 = scalar_lea.sflag [#allocation4], %s671_s23  ;;  %s245_s16 = int_to_ptr.hbm [resolvable:$true] %s244_s16 }
  0x3c   : > { %v206_v2 = vadd.f32 1.0, %v205_v1  ;;  %v209_v3 = vmul.f32 -0.5, %v205_v1  ;;  %v212_v6 = vand.u32 2147483647, %v205_v1  ;;  %s484_s29 = sshra.s32 %s245_s16, 4  ;;  %s490_s19 = scalar_lea.hbm %s724_s2, 16  ;;  %s485_s29 = int_to_ptr.hbm [resolvable:$true] %s484_s29 }
  0x3d   : > { %s486_s3 = scalar_lea.hbm %s485_s29, 8  ;;  %p491_p10 = scmp.lt.s32.totalorder %s485_s29, %s724_s2 }
  0x3e   : > { %406 = vlog2.f32 %v206_v2  ;;  %v210_v4 = vadd.f32 1.0, %v209_v3  ;;  %vm213_vm0 = vcmp.lt.f32.partialorder %v212_v6, 0.0004427343  ;;  %p487_p6 = scmp.ne.s32.totalorder %s485_s29, %s486_s3  ;;  %p492_p2 = scmp.lt.s32.totalorder %s490_s19, %s486_s3 }
  0x40   : > { %v405_v5 = vpop.eup %404  ;;  %v211_v9 = vmul.f32 %v210_v4, %v205_v1  ;;  %p488_p13 = pnand %p487_p6, %p607_p11  ;;  %p493_p9 = por %p492_p2, %p491_p10 }
  0x41   : > { %v203_v7 = vmul.f32 0.6931472, %v405_v5 }
  0x42   : > { %p489_p3 = pneg %p488_p13 }
  0x43   : > { %v204_v11 = vmax.f32 %v203_v7, -100.0 }
  0x44   : > { %v407_v10 = vpop.eup %406  ;;  %p494_p0 = pnand %p493_p9, %p489_p3 }
  0x45   : > { %v208_v12 = vmul.f32 0.6931472, %v407_v10  ;;  %v216_v16 = vmul.f32 %v204_v11, %v201_v8 }
  0x47   : > { %v214_v14 = vsel %vm213_vm0, %v211_v9, %v208_v12 }
  0x48   : > { %v215_v15 = vmax.f32 %v214_v14, -100.0 }
  0x4a   : > { %v218_v17 = vmul.f32 %v217_v13, %v215_v15 }
  0x4c   : > { %v219_v18 = vadd.f32 %v218_v17, %v216_v16 }
  0x4e   : > { %v220_v19 = vsub.f32 0.0, %v219_v18 }
  0x50   : > { %v221_v20 = vsub.f32 0.0, %v220_v19 }
  0x52   : > { %v222_v21 = vmul.f32 1.442695, %v221_v20 }
  0x54   : > { %408 = vpow2.f32 %v222_v21 }
  0x5a   : > { %v409_v22 = vpop.eup %408 }
  0x5b   : > { %v224_v23 = vsub.f32 1.0, %v409_v22 }
  0x5d   : > { %v225_v24 = vmul.f32 %v224_v23, %v224_v23 }
  0x5f   : > { %v226_v25 = vmul.f32 %v225_v24, %v220_v19 }
  0x61   : > { %228 = vst [vmem:[%s199_s8] sm:$0xff] %v226_v25 }
  0x62   : > { %497 = shalt.err (!%p494_p0)
}
  0x63   : > { %357 = dma.vmem_to_hbm [thread:$0]  (%p607_p11), %s243_s14, 128, %s245_s16, %s230_s17  }
  0x64 PF: > { %s256_s23 = sand.u32 1, %s528_s9   ;;  %p731_p1 = scmp.ge.s32.totalorder %s540_s12, 2 }
  0x65   : > { %s257_s27 = scalar_lea.sflag [#allocation4], %s256_s23 }
  0x66   : > { %p367_p4 = pnand %p731_p1, %p611_p12 }
  0x68   : > { %p368_p7 = pneg %p367_p4 }
  0x6a   : > { %523 = dma.done.wait (%p368_p7), %s257_s27, 128  }
  0x6b   : > { %525 = vsyncadd (%p368_p7), %s257_s27, 4294967168  ;;  %p18_p5 = scmp.ge.s32.totalorder %s582_s15, 4   ;;  %s732_s9 = smov %s532_s10 }
  0x6c   : > { %s733_s10 = smov %s536_s11  ;;  %s734_s11 = smov %s594_s18 }
  0x6d   : > { %s735_s12 = smov %s582_s15  ;;  %20 = sbr.rel (!%p18_p5) target bundleno = 7 (0x7), region = 86 }
  0x72   :  { %263 = vsyncpa [#allocation3], 1 }
  0x73   :  { %265 = vsyncpa [#allocation3 + $0x1], 1 }
  0x74   :  { %266 = vsyncpa [#allocation6], 1 }
  0x75   :  { %268 = vsyncpa [#allocation6 + $0x1], 1 }
  0x76   :  { %269 = vsyncpa [#allocation4], 1 }
  0x77   :  { %271 = vsyncpa [#allocation4 + $0x1], 1 }

</bundles_post_ra>
